<compile_context>
chip_gen: v6e
topology: v6e:2x2x1
jax: 0.10.0
libtpu: 0.0.40
codegen_flags: <defaults>
</compile_context>

<pallas_src>
import functools

import jax
import jax.numpy as jnp
from jax.experimental import pallas as pl
from jax.experimental.pallas import tpu as pltpu


# ---------------------------------------------------------------------------
# Tiling / VMEM helpers
# ---------------------------------------------------------------------------
def _round_up(n, m):
    return ((n + m - 1) // m) * m


def _pick_tile(n, target):
    """Largest multiple-of-8 divisor of n that is <= target.

    The wrapper pads so n is always a multiple of 8, hence this never falls
    back to a full (potentially VMEM-blowing) extent.
    """
    if n <= target:
        return n
    t = (target // 8) * 8
    while t >= 8:
        if n % t == 0:
            return t
        t -= 8
    return 8


def _vmem_budget_bytes():
    """~7/8 of physical per-core VMEM: ~56 MiB on v7x, ~112 MiB on v5e/v6e."""
    phys = 64 * 1024 * 1024  # conservative fallback (v7x per-core VMEM)
    try:
        phys = int(pltpu.get_tpu_info().vmem_capacity_bytes)
    except Exception:
        pass
    phys = max(32 * 1024 * 1024, min(phys, 128 * 1024 * 1024))
    return (phys * 7) // 8


def _stage2_vmem_est(Lp, Lq, E, H, A):
    """Stage-2 VMEM footprint estimate (BlockSpec double-buffers inputs)."""
    bf16, f32 = 2, 4
    db = 2
    return int(
        db * Lp * E * bf16          # k half (per-batch values / score rows)
        + db * E * Lp * bf16        # q half, transposed (per-batch)
        + db * H * Lp * f32         # rank-1 q-side term
        + db * Lq * H * f32         # rank-1 k-side term tile
        + db * Lq * Lp * bf16       # additive adjacency-bias tile
        + db * E * E * bf16         # W_out
        + db * Lq * E * f32         # output tile
        + 6 * Lq * Lp * f32         # score / exp / prob / |q+k| temporaries
        + 2 * Lq * E * f32          # out accumulator + per-head values
        + (Lq + Lp) * A * f32)      # per-head k_row / q_t upcasts


def _choose_lq(Lp, E, H, A, cap):
    """Largest multiple-of-8 divisor of Lp (<= 512) whose footprint fits cap."""
    target = min(Lp, 512)
    best, t = 8, 8
    while t <= target:
        if Lp % t == 0 and _stage2_vmem_est(Lp, t, E, H, A) <= (cap * 9) // 10:
            best = t
        t += 8
    return best


# ---------------------------------------------------------------------------
# Stage 1: QK projection over all B*Lp rows (row-tiled bf16 MXU matmul)
# ---------------------------------------------------------------------------
def _qk_proj_kernel(x_ref, wq_ref, wk_ref, q_ref, k_ref):
    # x_ref: (TM, E) bf16; wq_ref / wk_ref: (E, E) bf16 (head-major columns).
    # f32 MXU accumulation, bf16 store (halves HBM writeback / stage-2 DMA).
    x = x_ref[...]
    q_ref[...] = jnp.dot(x, wq_ref[...],
                         preferred_element_type=jnp.float32).astype(q_ref.dtype)
    k_ref[...] = jnp.dot(x, wk_ref[...],
                         preferred_element_type=jnp.float32).astype(k_ref.dtype)


# ---------------------------------------------------------------------------
# Stage 2: attention scores + masked softmax + aggregation + out projection
# ---------------------------------------------------------------------------
def _gat_attn_kernel(k_ref, qt_ref, qs_ref, ks_ref, bias_ref, aw2_ref, wout_ref,
                     out_ref, *, H, A, Lq):
    # k_ref   : (1, Lp, E)  bf16  k half; i-side score rows are a dynamic row
    #                             slice, full Lp rows are the aggregation values
    # qt_ref  : (1, E, Lp)  bf16  q half transposed -> per-head (A, Lp) rows are
    #                             lane-dense along the key axis
    # qs_ref  : (1, H, Lp)  f32   precomputed rank-1 c1 term (q / key-j side)
    # ks_ref  : (1, Lq, H)  f32   precomputed rank-1 c1 term (k / query-i side)
    # bias_ref: (1, Lq, Lp) bf16  additive adjacency bias (0 edge / -1e30)
    # aw2_ref : (A,) f32 in SMEM  c2-scaled attn_map weights (scalars)
    # wout_ref: (E, E)      bf16  output projection
    # out_ref : (1, Lq, E)  f32
    row0 = pl.multiple_of(pl.program_id(1) * Lq, 8)

    out_acc = None
    for h in range(H):                      # short trace-time head loop
        lo, hi = h * A, (h + 1) * A

        # Score inputs upcast to f32; every pairwise op below is lane-dense
        # over the key axis (Lp lanes), no cross-lane reduction.
        k_row = k_ref[0, pl.ds(row0, Lq), lo:hi].astype(jnp.float32)   # (Lq, A)
        q_t_h = qt_ref[0, lo:hi, :].astype(jnp.float32)                # (A, Lp)

        # score[i,j] = qs[j] + ks[i] + sum_a c2*a[a]*|k[i,a]+q[j,a]| + bias[i,j]
        s = (bias_ref[0].astype(jnp.float32)
             + ks_ref[0, :, h:h + 1] + qs_ref[0, h:h + 1, :])          # (Lq, Lp)
        for a in range(A):
            s = s + aw2_ref[a] * jnp.abs(k_row[:, a:a + 1] + q_t_h[a:a + 1, :])

        # Softmax over keys (f32; reciprocal on the EUP slot).
        m = jnp.max(s, axis=-1, keepdims=True)
        e = jnp.exp(s - m)
        p = e * pl.reciprocal(jnp.sum(e, axis=-1, keepdims=True), approx=True)

        # Per-head aggregation + projection:  (p @ k_h) @ W_out[hA:(h+1)A, :]
        # (same FLOPs as concat-then-project, N=E lane-dense, no scratch).
        v_h = jnp.dot(p.astype(jnp.bfloat16), k_ref[0, :, lo:hi],
                      preferred_element_type=jnp.float32)              # (Lq, A)
        contrib = jnp.dot(v_h.astype(jnp.bfloat16), wout_ref[lo:hi, :],
                          preferred_element_type=jnp.float32)          # (Lq, E)
        out_acc = contrib if out_acc is None else out_acc + contrib

    out_ref[0] = out_acc


# ---------------------------------------------------------------------------
# Wrapper
# ---------------------------------------------------------------------------
def gat_conv_pallas(embeddings, adj, w_qk, attn_w, w_out, *, H, leakage):
    B, L, E = embeddings.shape
    assert E % H == 0
    A = E // H

    # Pad the node axis to a multiple of 8 (padded keys masked out via the
    # bias; padded query rows sliced off at the end).
    Lp = _round_up(max(L, 8), 8)
    adj_b = adj.astype(jnp.bool_)
    if Lp != L:
        pad = Lp - L
        embeddings = jnp.pad(embeddings, ((0, 0), (0, pad), (0, 0)))
        adj_b = jnp.pad(adj_b, ((0, 0), (0, pad), (0, pad)),
                        constant_values=False)

    # Head-major split of the QK weight: columns [h*2A, h*2A+A) are q_h,
    # [h*2A+A, h*2A+2A) are k_h (matches qk.reshape(B,L,H,2A).chunk(2, -1)).
    w4 = w_qk.reshape(E, H, 2, A)
    w_q_bf16 = w4[:, :, 0, :].reshape(E, E).astype(jnp.bfloat16)
    w_k_bf16 = w4[:, :, 1, :].reshape(E, E).astype(jnp.bfloat16)
    w_out_bf16 = w_out.astype(jnp.bfloat16)
    emb_bf16 = embeddings.astype(jnp.bfloat16)

    # ---- Stage 1: QK projection over all B*Lp rows -------------------------
    rows = B * Lp
    tm = _pick_tile(rows, 256)
    x2d = emb_bf16.reshape(rows, E)
    q2d, k2d = pl.pallas_call(
        _qk_proj_kernel,
        out_shape=(jax.ShapeDtypeStruct((rows, E), jnp.bfloat16),
                   jax.ShapeDtypeStruct((rows, E), jnp.bfloat16)),
        grid_spec=pltpu.PrefetchScalarGridSpec(
            num_scalar_prefetch=0,
            grid=(rows // tm,),
            in_specs=[
                pl.BlockSpec((tm, E), lambda i: (i, 0)),
                pl.BlockSpec((E, E), lambda i: (0, 0)),
                pl.BlockSpec((E, E), lambda i: (0, 0)),
            ],
            out_specs=[pl.BlockSpec((tm, E), lambda i: (i, 0)),
                       pl.BlockSpec((tm, E), lambda i: (i, 0))],
        ),
        compiler_params=pltpu.CompilerParams(
            dimension_semantics=("parallel",)),
    )(x2d, w_q_bf16, w_k_bf16)

    q3 = q2d.reshape(B, Lp, E)
    k3 = k2d.reshape(B, Lp, E)

    # Layout plumbing: q transposed so per-head (A, Lp) rows are lane-dense
    # along the key axis inside the attention kernel.
    q_t = jnp.transpose(q3, (0, 2, 1))                                # (B, E, Lp)

    # LeakyReLU(x) = c1*x + c2*|x|.  The c1 part of the additive score is
    # rank-1; precompute it once per node (tiny einsums) instead of per tile.
    c1 = (1.0 + leakage) * 0.5
    c2 = (1.0 - leakage) * 0.5
    aw1 = (c1 * attn_w).astype(jnp.float32)                           # (A,)
    aw2 = (c2 * attn_w).astype(jnp.float32)                           # (A,)
    qs_t = jnp.einsum('blha,a->bhl',
                      q3.reshape(B, Lp, H, A).astype(jnp.float32), aw1)  # (B,H,Lp)
    ks = jnp.einsum('blha,a->blh',
                    k3.reshape(B, Lp, H, A).astype(jnp.float32), aw1)    # (B,Lp,H)

    # Adjacency as an additive bias (0 / -1e30) in bf16.
    bias = jnp.where(adj_b, 0.0, -1e30).astype(jnp.bfloat16)          # (B,Lp,Lp)

    # ---- Stage 2: attention (gridded over batch x query-row tiles) ---------
    cap = _vmem_budget_bytes()
    Lq = _choose_lq(Lp, E, H, A, cap)
    nqt = Lp // Lq
    est = _stage2_vmem_est(Lp, Lq, E, H, A)
    vmem_limit = int(min(cap, max(2 * est, 16 * 1024 * 1024)))

    kernel = functools.partial(_gat_attn_kernel, H=H, A=A, Lq=Lq)
    out = pl.pallas_call(
        kernel,
        out_shape=jax.ShapeDtypeStruct((B, Lp, E), jnp.float32),
        grid_spec=pltpu.PrefetchScalarGridSpec(
            num_scalar_prefetch=0,
            grid=(B, nqt),
            in_specs=[
                pl.BlockSpec((1, Lp, E), lambda b, it: (b, 0, 0)),    # k half
                pl.BlockSpec((1, E, Lp), lambda b, it: (b, 0, 0)),    # q half, T
                pl.BlockSpec((1, H, Lp), lambda b, it: (b, 0, 0)),    # rank-1 q
                pl.BlockSpec((1, Lq, H), lambda b, it: (b, it, 0)),   # rank-1 k
                pl.BlockSpec((1, Lq, Lp), lambda b, it: (b, it, 0)),  # mask bias
                pl.BlockSpec(memory_space=pltpu.MemorySpace.SMEM),    # aw2 scalars
                pl.BlockSpec((E, E), lambda b, it: (0, 0)),           # W_out
            ],
            out_specs=pl.BlockSpec((1, Lq, E), lambda b, it: (b, it, 0)),
        ),
        compiler_params=pltpu.CompilerParams(
            dimension_semantics=("parallel", "parallel"),
            vmem_limit_bytes=vmem_limit),
    )(k3, q_t, qs_t, ks, bias, aw2, w_out_bf16)
    return out[:, :L, :]


# ---------------------------------------------------------------------------
# Pure-JAX reference mirroring the PyTorch module.
#   mxu_dtype=float32                      -> exact f32 module semantics.
#   mxu_dtype=bfloat16, quantize_qk=True   -> same operand precision as the
#                                             kernel (bf16 MXU operands, bf16
#                                             qk storage, f32 accumulation).
# ---------------------------------------------------------------------------
def gat_conv_ref(embeddings, adj, w_qk, attn_w, w_out, *, H, leakage,
                 mxu_dtype=jnp.float32, quantize_qk=False):
    B, L, E = embeddings.shape
    A = E // H
    hi = jax.lax.Precision.HIGHEST
    cast = lambda x: x.astype(mxu_dtype).astype(jnp.float32)
    qk = jnp.dot(cast(embeddings), cast(w_qk), precision=hi)          # (B, L, 2E)
    if quantize_qk:
        qk = qk.astype(jnp.bfloat16).astype(jnp.float32)
    qk = qk.reshape(B, L, H, 2 * A).transpose(0, 2, 1, 3)             # (B, H, L, 2A)
    q, k = qk[..., :A], qk[..., A:]
    attn = q[:, :, None, :, :] + k[:, :, :, None, :]                  # (B,H,L,L,A)
    attn = jnp.where(attn >= 0, attn, leakage * attn)
    attn = jnp.sum(attn * attn_w, axis=-1)                            # (B, H, L, L)
    attn = jnp.where(adj[:, None, :, :], attn, jnp.finfo(jnp.float32).min)
    attn = jax.nn.softmax(attn, axis=-1)
    values = jnp.einsum('bhij,bhja->bhia', cast(attn), cast(k), precision=hi)
    values = values.transpose(0, 2, 1, 3).reshape(B, L, E)
    return jnp.dot(cast(values), cast(w_out), precision=hi)


if __name__ == "__main__":
    B, L, E, H = 2, 8, 32, 4
    A = E // H
    leakage = 0.2

    key = jax.random.PRNGKey(0)
    k_emb, k_adj, k_wqk, k_aw, k_wout = jax.random.split(key, 5)

    embeddings = jax.random.normal(k_emb, (B, L, E), dtype=jnp.float32)
    adj = jax.random.bernoulli(k_adj, 0.5, (B, L, L))
    # Self-loops: guarantees every query row has at least one edge (fully
    # masked rows are a degenerate case in both kernel and reference).
    adj = adj | jnp.eye(L, dtype=jnp.bool_)[None]

    # Deterministic "Linear(no bias)" parameters (stored transposed for x @ W).
    w_qk = jax.random.normal(k_wqk, (E, 2 * E), dtype=jnp.float32) / jnp.sqrt(E)
    attn_w = jax.random.normal(k_aw, (A,), dtype=jnp.float32) / jnp.sqrt(A)
    w_out = jax.random.normal(k_wout, (E, E), dtype=jnp.float32) / jnp.sqrt(E)

    out = jax.block_until_ready(
        gat_conv_pallas(embeddings, adj, w_qk, attn_w, w_out,
                        H=H, leakage=leakage))
    ref_match = jax.block_until_ready(
        gat_conv_ref(embeddings, adj, w_qk, attn_w, w_out, H=H, leakage=leakage,
                     mxu_dtype=jnp.bfloat16, quantize_qk=True))
    ref_f32 = jax.block_until_ready(
        gat_conv_ref(embeddings, adj, w_qk, attn_w, w_out, H=H, leakage=leakage,
                     mxu_dtype=jnp.float32))

    assert out.shape == (B, L, E) and out.dtype == jnp.float32
    err_match = float(jnp.max(jnp.abs(out - ref_match)))
    err_f32 = float(jnp.max(jnp.abs(out - ref_f32)))
    # Tight check against a reference with matching operand precision (bf16
    # matmul operands + bf16 qk storage, f32 accumulation); slack covers the
    # EUP approx reciprocal and MXU accumulation order.
    assert jnp.allclose(out, ref_match, rtol=2e-2, atol=2e-2), (
        f"max abs err vs matched-precision ref = {err_match}")
    # Loose sanity check against exact f32 module semantics.
    assert jnp.allclose(out, ref_f32, rtol=1e-1, atol=1e-1), (
        f"max abs err vs f32 ref = {err_f32}")

    print("KERNEL_OK")
</pallas_src>

<mosaic_0001>
module attributes {stable_mosaic.version = 11 : i64} {
  func.func @_qk_proj_kernel(%arg0: i32, %arg1: memref<16x32xbf16, #tpu.memory_space<vmem>>, %arg2: memref<32x32xbf16, #tpu.memory_space<vmem>>, %arg3: memref<32x32xbf16, #tpu.memory_space<vmem>>, %arg4: memref<16x32xbf16, #tpu.memory_space<vmem>>, %arg5: memref<16x32xbf16, #tpu.memory_space<vmem>>) attributes {dimension_semantics = [#tpu.dimension_semantics<parallel>], iteration_bounds = array<i64: 1>, scalar_prefetch = 0 : i64, scratch_operands = 0 : i64, tpu.core_type = #tpu.core_type<tc>, window_params = [{transform_indices = @transform_0, window_bounds = array<i64: 16, 32>}, {pipeline_mode = #tpu.pipeline_mode<synchronous>, transform_indices = @transform_1, window_bounds = array<i64: 32, 32>}, {pipeline_mode = #tpu.pipeline_mode<synchronous>, transform_indices = @transform_2, window_bounds = array<i64: 32, 32>}, {transform_indices = @transform_3, window_bounds = array<i64: 16, 32>}, {transform_indices = @transform_4, window_bounds = array<i64: 16, 32>}]} {
    %c0 = arith.constant 0 : index
    %c0_0 = arith.constant 0 : index
    %0 = vector.load %arg1[%c0, %c0_0] : memref<16x32xbf16, #tpu.memory_space<vmem>>, vector<16x32xbf16>
    %c0_1 = arith.constant 0 : index
    %c0_2 = arith.constant 0 : index
    %1 = vector.load %arg2[%c0_1, %c0_2] : memref<32x32xbf16, #tpu.memory_space<vmem>>, vector<32x32xbf16>
    %cst = arith.constant dense<0.000000e+00> : vector<16x32xf32>
    %2 = tpu.matmul %0, %1, %cst {dimension_numbers = #tpu.dot_dimension_numbers<[1], [0], [0], [1], [0, 0, 1, 1], [], []>} : vector<16x32xbf16>, vector<32x32xbf16>, vector<16x32xf32> -> vector<16x32xf32>
    %3 = arith.truncf %2 : vector<16x32xf32> to vector<16x32xbf16>
    %c0_3 = arith.constant 0 : index
    %c0_4 = arith.constant 0 : index
    %4 = vector.load %arg4[%c0_3, %c0_4] : memref<16x32xbf16, #tpu.memory_space<vmem>>, vector<16x32xbf16>
    tpu.vector_store %arg4[%c0_3, %c0_4], %3 {strides = array<i32>} : memref<16x32xbf16, #tpu.memory_space<vmem>>, vector<16x32xbf16>,
    %c0_5 = arith.constant 0 : index
    %c0_6 = arith.constant 0 : index
    %5 = vector.load %arg3[%c0_5, %c0_6] : memref<32x32xbf16, #tpu.memory_space<vmem>>, vector<32x32xbf16>
    %cst_7 = arith.constant dense<0.000000e+00> : vector<16x32xf32>
    %6 = tpu.matmul %0, %5, %cst_7 {dimension_numbers = #tpu.dot_dimension_numbers<[1], [0], [0], [1], [0, 0, 1, 1], [], []>} : vector<16x32xbf16>, vector<32x32xbf16>, vector<16x32xf32> -> vector<16x32xf32>
    %7 = arith.truncf %6 : vector<16x32xf32> to vector<16x32xbf16>
    %c0_8 = arith.constant 0 : index
    %c0_9 = arith.constant 0 : index
    %8 = vector.load %arg5[%c0_8, %c0_9] : memref<16x32xbf16, #tpu.memory_space<vmem>>, vector<16x32xbf16>
    tpu.vector_store %arg5[%c0_8, %c0_9], %7 {strides = array<i32>} : memref<16x32xbf16, #tpu.memory_space<vmem>>, vector<16x32xbf16>,
    return
  }
  func.func @transform_0(%arg0: i32) -> (i32, i32) {
    %c0_i32 = arith.constant 0 : i32
    %c0_i32_0 = arith.constant 0 : i32
    return %arg0, %c0_i32 : i32, i32
  }
  func.func @transform_1(%arg0: i32) -> (i32, i32) {
    %c0_i32 = arith.constant 0 : i32
    %c0_i32_0 = arith.constant 0 : i32
    %c0_i32_1 = arith.constant 0 : i32
    return %c0_i32, %c0_i32_0 : i32, i32
  }
  func.func @transform_2(%arg0: i32) -> (i32, i32) {
    %c0_i32 = arith.constant 0 : i32
    %c0_i32_0 = arith.constant 0 : i32
    %c0_i32_1 = arith.constant 0 : i32
    return %c0_i32, %c0_i32_0 : i32, i32
  }
  func.func @transform_3(%arg0: i32) -> (i32, i32) {
    %c0_i32 = arith.constant 0 : i32
    %c0_i32_0 = arith.constant 0 : i32
    return %arg0, %c0_i32 : i32, i32
  }
  func.func @transform_4(%arg0: i32) -> (i32, i32) {
    %c0_i32 = arith.constant 0 : i32
    %c0_i32_0 = arith.constant 0 : i32
    return %arg0, %c0_i32 : i32, i32
  }
}

</mosaic_0001>

<bundles_post_ra>
// kernel: tpu_custom_call.1
= control target key start
LH: loop header
LB: loop body
LE: loop exit
PB: predicated region body
PF: predicated region fallthrough
CT: control target
= control target key end

     0   :  { %10 = vsyncpa [#allocation3], 0  ;;  %s467_s0 = inlined_call_operand.hbm [shape: bf16[16,32], index: 0, kind: input, shape index: {}]   ;;  %s468_s1 = inlined_call_operand.hbm [shape: bf16[32,32], index: 1, kind: input, shape index: {}]   ;;  %s469_s2 = inlined_call_operand.hbm [shape: bf16[32,32], index: 2, kind: input, shape index: {}]   ;;  %s470_s3 = inlined_call_operand.hbm [shape: bf16[16,32], index: 3, kind: output, shape index: {0}]   ;;  %s471_s4 = inlined_call_operand.hbm [shape: bf16[16,32], index: 4, kind: output, shape index: {1}]  }
   0x1   :  { %11 = vsyncpa [#allocation6], 0 }
   0x2   :  { %12 = vsyncpa [#allocation4], 0 }
   0x3   :  { %13 = vsyncpa [#allocation10], 0  ;;  %s399_s15 = smov [#allocation5]   ;;  %s400_s17 = smov [#allocation2]  }
   0x4   :  { %s31_s16 = sshll.u32 %s399_s15, 4  ;;  %s19_s18 = sshll.u32 %s400_s17, 4  ;;  %s32_s16 = int_to_ptr.vmem [resolvable:$true] %s31_s16  ;;  %s20_s18 = int_to_ptr.vmem [resolvable:$true] %s19_s18 }
   0x5   :  { %s299_s19 = scalar_lea.vmem %s32_s16, 256  ;;  %p304_p1 = scmp.lt.s32.totalorder %s32_s16, %s32_s16 }
   0x6   :  { %p300_p0 = scmp.ne.s32.totalorder %s32_s16, %s299_s19  ;;  %p305_p2 = scmp.lt.s32.totalorder %s299_s19, %s299_s19 }
   0x8   :  { %p306_p3 = por %p305_p2, %p304_p1 }
   0xa   :  { %p307_p4 = pnand %p306_p3, %p300_p0 }
   0xc   :  { %310 = shalt.err (!%p307_p4)
}
   0xd   :  { %s401_s20 = smov 64   ;;  %s402_s21 = smov 4  }
   0xe   :  { %37 = dma.hbm_to_vmem [thread:$0]  %s468_s1, 256, %s32_s16, [#allocation6], %s401_s20, %s401_s20, %s402_s21  }
   0xf   :  { %s319_s24 = scalar_lea.vmem %s20_s18, 128  ;;  %p324_p6 = scmp.lt.s32.totalorder %s20_s18, %s20_s18 }
  0x10   :  { %p320_p5 = scmp.ne.s32.totalorder %s20_s18, %s319_s24  ;;  %p325_p7 = scmp.lt.s32.totalorder %s319_s24, %s319_s24 }
  0x12   :  { %p326_p8 = por %p325_p7, %p324_p6 }
  0x14   :  { %p327_p9 = pnand %p326_p8, %p320_p5 }
  0x16   :  { %330 = shalt.err (!%p327_p9)
}
  0x17   :  { %25 = dma.hbm_to_vmem [thread:$0]  %s467_s0, 128, %s20_s18, [#allocation3], %s401_s20, %s401_s20, %s402_s21  }
  0x18   :  { %s403_s27 = smov [#allocation7]  }
  0x19   :  { %s43_s28 = sshll.u32 %s403_s27, 4  ;;  %s44_s28 = int_to_ptr.vmem [resolvable:$true] %s43_s28 }
  0x1a   :  { %s339_s29 = scalar_lea.vmem %s44_s28, 256  ;;  %p344_p11 = scmp.lt.s32.totalorder %s44_s28, %s44_s28 }
  0x1b   :  { %p340_p10 = scmp.ne.s32.totalorder %s44_s28, %s339_s29  ;;  %p345_p12 = scmp.lt.s32.totalorder %s339_s29, %s339_s29 }
  0x1d   :  { %p346_p13 = por %p345_p12, %p344_p11 }
  0x1f   :  { %p347_p0 = pnand %p346_p13, %p340_p10 }
  0x21   :  { %350 = shalt.err (!%p347_p0)
}
  0x22   :  { %49 = dma.hbm_to_vmem [thread:$0]  %s469_s2, 256, %s44_s28, [#allocation6], %s401_s20, %s401_s20, %s402_s21  }
  0x23   :  { %391 = dma.done.wait [#allocation3], 128  }
  0x24   :  { %392 = vsyncadd [#allocation3], 4294967168 }
  0x25   :  { %393 = dma.done.wait [#allocation6], 512  }
  0x26   :  { %394 = vsyncadd [#allocation6], 4294966784  ;;  %v404_v0 = vmov 0.0   ;;  %vm405_vm0 = vmmov 0   ;;  %v286_v1 = vld [vmem:[#allocation5 + $0x8] sm:$0xff]   ;;  %v287_v2 = vld [vmem:[#allocation7 + $0x8] sm:$0xff]  }
  0x27   :  { %261 = vmatprep.subr.bf16.mxu0 %v404_v0  ;;  %269 = vmatprep.subr.bf16.mxu1 %v404_v0  ;;  %v288_v3 = vld [vmem:[#allocation5] sm:$0xff]   ;;  %v289_v4 = vld [vmem:[#allocation7] sm:$0xff]   ;;  %v290_v5 = vld [vmem:[#allocation2] sm:$0xff]   ;;  %vm83_vm1 = vcmask 261120   ;;  %vm136_vm2 = vcmask 257024   ;;  %s406_s0 = smov [#allocation8]  }
  0x28   :  { %265 = vmatprep.mubr.msk.bf16.mxu0 %vm405_vm0, %v404_v0  ;;  %273 = vmatprep.mubr.msk.bf16.mxu1 %vm405_vm0, %v404_v0  ;;  %s211_s2 = sshll.u32 %s406_s0, 4  ;;  %s407_s5 = smov [#allocation9]   ;;  %s212_s2 = int_to_ptr.vmem [resolvable:$true] %s211_s2 }
  0x29   :  { %262 = vmatpush3.bf16.msra.mxu0 %v286_v1  ;;  %270 = vmatpush3.bf16.msra.mxu1 %v287_v2  ;;  %s223_s6 = sshll.u32 %s407_s5, 4  ;;  %s351_s7 = scalar_lea.vmem %s212_s2, 128  ;;  %s224_s6 = int_to_ptr.vmem [resolvable:$true] %s223_s6 }
  0x2a   :  { %263 = vmatprep.subr.bf16.mxu0 %v404_v0  ;;  %271 = vmatprep.subr.bf16.mxu1 %v404_v0  ;;  %p352_p1 = scmp.ne.s32.totalorder %s212_s2, %s351_s7  ;;  %p356_p2 = scmp.lt.s32.totalorder %s212_s2, %s212_s2 }
  0x2b   :  { %p357_p3 = scmp.lt.s32.totalorder %s351_s7, %s351_s7 }
  0x2d   :  { %264 = vmatpush3.bf16.msra.mxu0 %v288_v3  ;;  %272 = vmatpush3.bf16.msra.mxu1 %v289_v4  ;;  %p358_p4 = por %p357_p3, %p356_p2 }
  0x2f   :  { %p359_p5 = pnand %p358_p4, %p352_p1 }
  0x30   :  { %266 = vmatmul.mubr.msk.bf16.vlgmr.msra.gmra.mxu0 %vm83_vm1, %v290_v5  ;;  %274 = vmatmul.mubr.msk.bf16.vlgmr.msra.gmra.mxu1 %vm83_vm1, %v290_v5 }
  0xf0   :  { %v121_v6 = vpop.f32.mrf.mxu0  ;;  %v189_v8 = vpop.f32.mrf.mxu1 }
  0xf1   :  { %v251_v7 = vpack.c.bf16 %v121_v6, %v121_v6  ;;  %v253_v9 = vpack.c.bf16 %v189_v8, %v189_v8 }
  0xf2   :  { %v267_v10 = vpop.f32.mrf.mxu0  ;;  %v275_v11 = vpop.f32.mrf.mxu1 }
  0xf3   :  { %137 = vst.msk [vmem:[#allocation8] sm:$0xf] %vm136_vm2, %v251_v7  ;;  %204 = vst.msk [vmem:[#allocation9] sm:$0xf] %vm136_vm2, %v253_v9 }
  0xf4   :  { %v124_v12 = vpop.f32.mrf.mxu0  ;;  %v192_v14 = vpop.f32.mrf.mxu1 }
  0xf5   :  { %v252_v13 = vpack.c.bf16 %v124_v12, %v124_v12  ;;  %v254_v15 = vpack.c.bf16 %v192_v14, %v192_v14 }
  0xf6   :  { %v268_v16 = vpop.f32.mrf.mxu0  ;;  %v276_v17 = vpop.f32.mrf.mxu1 }
  0xf7   :  { %138 = vst.msk [vmem:[#allocation8 + $0x4] sm:$0xf] %vm136_vm2, %v252_v13 }
  0xf8   :  { %362 = shalt.err (!%p359_p5)
}
  0xf9   :  { %217 = dma.vmem_to_hbm [thread:$0]  %s212_s2, 128, %s470_s3, [#allocation4], %s401_s20, %s401_s20, %s402_s21   ;;  %205 = vst.msk [vmem:[#allocation9 + $0x4] sm:$0xf] %vm136_vm2, %v254_v15 }
  0xfa   :  { %s371_s10 = scalar_lea.vmem %s224_s6, 128  ;;  %p376_p7 = scmp.lt.s32.totalorder %s224_s6, %s224_s6 }
  0xfb   :  { %p372_p6 = scmp.ne.s32.totalorder %s224_s6, %s371_s10  ;;  %p377_p8 = scmp.lt.s32.totalorder %s371_s10, %s371_s10 }
  0xfd   :  { %p378_p9 = por %p377_p8, %p376_p7 }
  0xff   :  { %p379_p10 = pnand %p378_p9, %p372_p6 }
 0x101   :  { %382 = shalt.err (!%p379_p10)
}
 0x102   :  { %229 = dma.vmem_to_hbm [thread:$0]  %s224_s6, 128, %s471_s4, [#allocation10], %s401_s20, %s401_s20, %s402_s21  }
 0x103   :  { %395 = dma.done.wait [#allocation4], 128  }
 0x104   :  { %396 = vsyncadd [#allocation4], 4294967168 }
 0x105   :  { %397 = dma.done.wait [#allocation10], 128  }
 0x106   :  { %398 = vsyncadd [#allocation10], 4294967168 }
 0x107   :  { %236 = vsyncpa [#allocation3], 1 }
 0x108   :  { %237 = vsyncpa [#allocation6], 1 }
 0x109   :  { %238 = vsyncpa [#allocation4], 1 }
 0x10a   :  { %239 = vsyncpa [#allocation10], 1 }

</bundles_post_ra>
